<compile_context>
chip_gen: v7x
topology: tpu7x:2x2x1
jax: 0.10.0
libtpu: 0.0.40
codegen_flags: <defaults>
</compile_context>

<pallas_src>
import functools

import jax
import jax.numpy as jnp
from jax import lax
from jax.experimental import pallas as pl
from jax.experimental.pallas import tpu as pltpu

_INV_SQRT2 = 0.7071067811865476
_SQRT_2_OVER_PI = 0.7978845608028654


def _block_kernel(x_ref, w_ref, b_ref, o_ref, *, matmul_dtype, approximate):
    # x_ref: (TB, D)   w_ref: (D, D)   b_ref: (1, D)   o_ref: (TB, D)
    x = x_ref[...]

    # Linear: y = x @ W + b   (MXU matmul, f32 accumulation).
    # W is already stored in matmul_dtype by the wrapper (no in-kernel cast of
    # the resident weight); only the streamed x tile is cast if needed.
    y = jnp.dot(x.astype(matmul_dtype), w_ref[...],
                preferred_element_type=jnp.float32)
    y = y + b_ref[...].astype(jnp.float32)  # broadcast bias over batch rows

    if approximate:
        # tanh-approximate GELU: routes the nonlinearity through the EUP
        # (separate bundle slot) instead of a long erf polynomial on the VPU.
        # Use when the VALU slot binds (v7x at per-TC HBM roofline).
        inner = _SQRT_2_OVER_PI * (y + 0.044715 * y * y * y)
        g = 0.5 * y * (1.0 + jnp.tanh(inner))
    else:
        # Exact GELU (matches torch.nn.GELU(approximate='none')):
        #   gelu(y) = 0.5 * y * (1 + erf(y / sqrt(2)))
        g = 0.5 * y * (1.0 + lax.erf(y * jnp.float32(_INV_SQRT2)))

    # Residual add.
    o_ref[...] = (x.astype(jnp.float32) + g).astype(o_ref.dtype)


def _choose_tile_b(B, D, itemsize, *, min_grid_steps, target_tile_bytes):
    """Pick a batch tile: ~target_tile_bytes per x tile, >= min_grid_steps
    grid steps when B is large enough, rows a multiple of 8 (or == B)."""
    # Largest row count whose x tile is ~target_tile_bytes (multiple of 8).
    rows_cap = max(8, (target_tile_bytes // (D * itemsize)) // 8 * 8)
    if B <= max(64, 8 * min_grid_steps):
        # Too small to benefit from multiple grid steps / TC sharding: one
        # step covering the whole (possibly non-multiple-of-8) batch.
        return B
    # Want >= min_grid_steps steps (>= 2 per TC on v7x) without shrinking
    # tiles below 8 rows; cap tile bytes for per-step-overhead amortization
    # while the double-buffered x+out footprint stays well under v5e's
    # 16 MiB default scoped VMEM.
    desired = -(-B // min_grid_steps)          # cdiv
    desired = (desired + 7) // 8 * 8           # round up to sublane multiple
    return max(8, min(rows_cap, desired))


def block_forward(x, w, b, *, tile_b=None, matmul_dtype=None,
                  approximate_gelu=False, min_grid_steps=4,
                  target_tile_bytes=2 << 20):
    """Fused x + GELU(x @ w + b).

    x: [B, D], w: [D_in, D_out] = torch weight.T, b: [D].
    """
    B, D = x.shape
    assert w.shape == (D, D) and b.shape == (D,)

    if matmul_dtype is None:
        matmul_dtype = x.dtype  # f32 by default (matches torch reference)
    matmul_dtype = jnp.dtype(matmul_dtype)

    # Pre-cast the weight once in the wrapper (opt-in bf16 path): halves its
    # HBM/VMEM footprint and avoids a per-grid-step cast in the kernel.
    if w.dtype != matmul_dtype:
        w = w.astype(matmul_dtype)

    xo_itemsize = jnp.dtype(x.dtype).itemsize
    if tile_b is None:
        tile_b = _choose_tile_b(B, D, xo_itemsize,
                                min_grid_steps=min_grid_steps,
                                target_tile_bytes=target_tile_bytes)
    tile_b = min(tile_b, B)
    if tile_b != B:
        tile_b = max(8, tile_b // 8 * 8)  # (8,128) block-shape constraint

    b2d = b.reshape(1, D)
    grid = (pl.cdiv(B, tile_b),)

    # Explicit scoped-VMEM budget: double-buffered x/out tiles + resident
    # (double-buffered) W and bias, with headroom. >= 32 MiB (safe above
    # v5e's 16 MiB default), capped at 64 MiB (v7x physical VMEM).
    stream_bytes = 2 * 2 * tile_b * D * xo_itemsize            # x + out, 2 bufs
    resident_bytes = 2 * (D * D * matmul_dtype.itemsize         # W, 2 bufs
                          + 8 * D * jnp.dtype(b.dtype).itemsize)  # padded bias
    vmem_limit = int(min(64 << 20,
                         max(stream_bytes + resident_bytes + (4 << 20),
                             32 << 20)))

    cost = pl.CostEstimate(
        flops=2 * B * D * D,
        transcendentals=B * D,                 # erf/tanh per element
        bytes_accessed=(2 * B * D * xo_itemsize
                        + D * D * matmul_dtype.itemsize
                        + D * jnp.dtype(b.dtype).itemsize),
    )

    kernel = functools.partial(_block_kernel, matmul_dtype=matmul_dtype,
                               approximate=approximate_gelu)

    return pl.pallas_call(
        kernel,
        out_shape=jax.ShapeDtypeStruct((B, D), x.dtype),
        grid=grid,
        in_specs=[
            pl.BlockSpec((tile_b, D), lambda i: (i, 0)),   # x tile (streams)
            pl.BlockSpec((D, D), lambda i: (0, 0)),        # weight (resident)
            pl.BlockSpec((1, D), lambda i: (0, 0)),        # bias (resident)
        ],
        out_specs=pl.BlockSpec((tile_b, D), lambda i: (i, 0)),
        compiler_params=pltpu.CompilerParams(
            dimension_semantics=("parallel",),   # megacore-shardable batch axis
            vmem_limit_bytes=vmem_limit,
        ),
        cost_estimate=cost,
    )(x, w, b2d)


def _reference(x, w, b):
    y = x @ w + b
    g = 0.5 * y * (1.0 + lax.erf(y / jnp.sqrt(jnp.float32(2.0))))
    return x + g


if __name__ == "__main__":
    key = jax.random.PRNGKey(0)
    kx, kw, kb, kx2 = jax.random.split(key, 4)

    # Small shape consistent with the module: Block(size=128) on a batch of 16.
    B, D = 16, 128
    x = jax.random.normal(kx, (B, D), dtype=jnp.float32)
    # Deterministic "Linear" params (stored as W[in, out] = torch weight.T).
    bound = 1.0 / jnp.sqrt(jnp.float32(D))
    w = jax.random.uniform(kw, (D, D), minval=-bound, maxval=bound,
                           dtype=jnp.float32)
    b = jax.random.uniform(kb, (D,), minval=-bound, maxval=bound,
                           dtype=jnp.float32)

    out = jax.block_until_ready(block_forward(x, w, b))
    ref = _reference(x, w, b)
    assert out.shape == (B, D)
    assert jnp.allclose(out, ref, atol=1e-5, rtol=1e-5), (
        float(jnp.max(jnp.abs(out - ref))))

    # Secondary check: heuristic multi-step grid (>= 4 steps for v7x TC
    # sharding) with a partial last tile.
    B2 = 1040
    x2 = jax.random.normal(kx2, (B2, D), dtype=jnp.float32)
    out2 = jax.block_until_ready(block_forward(x2, w, b))
    ref2 = _reference(x2, w, b)
    assert out2.shape == (B2, D)
    assert jnp.allclose(out2, ref2, atol=1e-5, rtol=1e-5), (
        float(jnp.max(jnp.abs(out2 - ref2))))

    print("KERNEL_OK")
</pallas_src>

<mosaic_0001>
module attributes {stable_mosaic.version = 11 : i64} {
  func.func @_block_kernel(%arg0: i32, %arg1: memref<16x128xf32, #tpu.memory_space<vmem>>, %arg2: memref<128x128xf32, #tpu.memory_space<vmem>>, %arg3: memref<1x128xf32, #tpu.memory_space<vmem>>, %arg4: memref<16x128xf32, #tpu.memory_space<vmem>>) attributes {dimension_semantics = [#tpu.dimension_semantics<parallel>], iteration_bounds = array<i64: 1>, scalar_prefetch = 0 : i64, scratch_operands = 0 : i64, tpu.core_type = #tpu.core_type<tc>, window_params = [{transform_indices = @transform_0, window_bounds = array<i64: 16, 128>}, {pipeline_mode = #tpu.pipeline_mode<synchronous>, transform_indices = @transform_1, window_bounds = array<i64: 128, 128>}, {pipeline_mode = #tpu.pipeline_mode<synchronous>, transform_indices = @transform_2, window_bounds = array<i64: 1, 128>}, {transform_indices = @transform_3, window_bounds = array<i64: 16, 128>}]} {
    %c0 = arith.constant 0 : index
    %c0_0 = arith.constant 0 : index
    %0 = vector.load %arg1[%c0, %c0_0] : memref<16x128xf32, #tpu.memory_space<vmem>>, vector<16x128xf32>
    %c0_1 = arith.constant 0 : index
    %c0_2 = arith.constant 0 : index
    %1 = vector.load %arg2[%c0_1, %c0_2] : memref<128x128xf32, #tpu.memory_space<vmem>>, vector<128x128xf32>
    %cst = arith.constant dense<0.000000e+00> : vector<16x128xf32>
    %2 = tpu.matmul %0, %1, %cst {dimension_numbers = #tpu.dot_dimension_numbers<[1], [0], [0], [1], [0, 0, 1, 1], [], []>} : vector<16x128xf32>, vector<128x128xf32>, vector<16x128xf32> -> vector<16x128xf32>
    %c0_3 = arith.constant 0 : index
    %c0_4 = arith.constant 0 : index
    %3 = vector.load %arg3[%c0_3, %c0_4] : memref<1x128xf32, #tpu.memory_space<vmem>>, vector<1x128xf32>
    %4 = vector.broadcast %3 : vector<1x128xf32> to vector<16x128xf32>
    %5 = arith.addf %2, %4 : vector<16x128xf32>
    %cst_5 = arith.constant 5.000000e-01 : f32
    %6 = vector.broadcast %cst_5 : f32 to vector<16x128xf32>
    %7 = arith.mulf %6, %5 : vector<16x128xf32>
    %cst_6 = arith.constant 0.707106769 : f32
    %8 = vector.broadcast %cst_6 : f32 to vector<16x128xf32>
    %9 = arith.mulf %5, %8 : vector<16x128xf32>
    %10 = math.erf %9 : vector<16x128xf32>
    %cst_7 = arith.constant 1.000000e+00 : f32
    %11 = vector.broadcast %cst_7 : f32 to vector<16x128xf32>
    %12 = arith.addf %11, %10 : vector<16x128xf32>
    %13 = arith.mulf %7, %12 : vector<16x128xf32>
    %14 = arith.addf %0, %13 : vector<16x128xf32>
    %c0_8 = arith.constant 0 : index
    %c0_9 = arith.constant 0 : index
    %15 = vector.load %arg4[%c0_8, %c0_9] : memref<16x128xf32, #tpu.memory_space<vmem>>, vector<16x128xf32>
    tpu.vector_store %arg4[%c0_8, %c0_9], %14 {strides = array<i32>} : memref<16x128xf32, #tpu.memory_space<vmem>>, vector<16x128xf32>,
    return
  }
  func.func @transform_0(%arg0: i32) -> (i32, i32) {
    %c0_i32 = arith.constant 0 : i32
    %c0_i32_0 = arith.constant 0 : i32
    return %arg0, %c0_i32 : i32, i32
  }
  func.func @transform_1(%arg0: i32) -> (i32, i32) {
    %c0_i32 = arith.constant 0 : i32
    %c0_i32_0 = arith.constant 0 : i32
    %c0_i32_1 = arith.constant 0 : i32
    return %c0_i32, %c0_i32_0 : i32, i32
  }
  func.func @transform_2(%arg0: i32) -> (i32, i32) {
    %c0_i32 = arith.constant 0 : i32
    %c0_i32_0 = arith.constant 0 : i32
    %c0_i32_1 = arith.constant 0 : i32
    return %c0_i32, %c0_i32_0 : i32, i32
  }
  func.func @transform_3(%arg0: i32) -> (i32, i32) {
    %c0_i32 = arith.constant 0 : i32
    %c0_i32_0 = arith.constant 0 : i32
    return %arg0, %c0_i32 : i32, i32
  }
}

</mosaic_0001>

<bundles_post_ra>
// kernel: tpu_custom_call.1
= control target key start
LH: loop header
LB: loop body
LE: loop exit
PB: predicated region body
PF: predicated region fallthrough
CT: control target
= control target key end

     0   :  { %8 = vsyncpa [#allocation3], 0  ;;  %s415_s0 = inlined_call_operand.hbm [shape: f32[16,128], index: 0, kind: input, shape index: {}]   ;;  %s416_s1 = inlined_call_operand.hbm [shape: f32[128,128], index: 1, kind: input, shape index: {}]   ;;  %s417_s2 = inlined_call_operand.vmem [shape: f32[1,128], index: 2, kind: input, shape index: {}]   ;;  %s418_s3 = inlined_call_operand.hbm [shape: f32[16,128], index: 3, kind: output, shape index: {}]  }
   0x1   :  { %9 = vsyncpa [#allocation6], 0 }
   0x2   :  { %10 = vsyncpa [#allocation4], 0  ;;  %s342_s12 = smov [#allocation2]   ;;  %s270_s16 = scalar_lea.hbm %s415_s0, 256 }
   0x3   :  { %s16_s13 = sshll.u32 %s342_s12, 4  ;;  %p271_p0 = scmp.ne.s32.totalorder %s415_s0, %s270_s16  ;;  %s17_s13 = int_to_ptr.vmem [resolvable:$true] %s16_s13 }
   0x4   :  { %p274_p1 = scmp.lt.u32.totalorder %s270_s16, %s415_s0 }
   0x6   :  { %p276_p2 = pnand %p274_p1, %p271_p0 }
   0x8   :  { %279 = shalt.err (!%p276_p2)
}
   0x9   :  { %s280_s21 = scalar_lea.vmem %s17_s13, 256  ;;  %p285_p4 = scmp.lt.s32.totalorder %s17_s13, %s17_s13 }
   0xa   :  { %p281_p3 = scmp.ne.s32.totalorder %s17_s13, %s280_s21  ;;  %p286_p5 = scmp.lt.s32.totalorder %s280_s21, %s280_s21 }
   0xc   :  { %p287_p6 = por %p286_p5, %p285_p4 }
   0xe   :  { %p288_p7 = pnand %p287_p6, %p281_p3 }
  0x10   :  { %291 = shalt.err (!%p288_p7)
}
  0x11   :  { %s343_s22 = smov 128   ;;  %s344_s23 = smov 8  }
  0x12   :  { %22 = dma.hbm_to_vmem [thread:$0]  %s415_s0, 256, %s17_s13, [#allocation3], %s343_s22, %s343_s22, %s344_s23  }
  0x13   :  { %s345_s26 = smov [#allocation5]   ;;  %s292_s30 = scalar_lea.hbm %s416_s1, 2048 }
  0x14   :  { %s28_s27 = sshll.u32 %s345_s26, 4  ;;  %p293_p8 = scmp.ne.s32.totalorder %s416_s1, %s292_s30  ;;  %s29_s27 = int_to_ptr.vmem [resolvable:$true] %s28_s27 }
  0x15   :  { %p296_p9 = scmp.lt.u32.totalorder %s292_s30, %s416_s1 }
  0x17   :  { %p298_p10 = pnand %p296_p9, %p293_p8 }
  0x19   :  { %301 = shalt.err (!%p298_p10)
}
  0x1a   :  { %s302_s8 = scalar_lea.vmem %s29_s27, 2048  ;;  %p307_p12 = scmp.lt.s32.totalorder %s29_s27, %s29_s27 }
  0x1b   :  { %p303_p11 = scmp.ne.s32.totalorder %s29_s27, %s302_s8  ;;  %p308_p13 = scmp.lt.s32.totalorder %s302_s8, %s302_s8 }
  0x1d   :  { %p309_p0 = por %p308_p13, %p307_p12 }
  0x1f   :  { %p310_p1 = pnand %p309_p0, %p303_p11 }
  0x21   :  { %313 = shalt.err (!%p310_p1)
}
  0x22   :  { %34 = dma.hbm_to_vmem [thread:$0]  %s416_s1, 2048, %s29_s27, [#allocation6], %s343_s22, %s343_s22, %s344_s23  }
  0x23   :  { %336 = dma.done.wait [#allocation3], 256  }
  0x24   :  { %337 = vsyncadd [#allocation3], 4294967040 }
  0x25   :  { %338 = dma.done.wait [#allocation6], 2048  }
  0x26   :  { %339 = vsyncadd [#allocation6], 4294965248  ;;  %v45_v0 = vld [vmem:[#allocation5] sm:$0xff]  ;;  %v46_v1 = vld [vmem:[#allocation5 + $0x8] sm:$0xff]  ;;  %s346_s11 = smov [#allocation7]  }
  0x27   :  { %v47_v2 = vld [vmem:[#allocation5 + $0x10] sm:$0xff]  ;;  %v229_v3 = vpack.c.bf16 %v46_v1, %v45_v0  ;;  %v48_v4 = vld [vmem:[#allocation5 + $0x18] sm:$0xff]  ;;  %v49_v6 = vld [vmem:[#allocation5 + $0x20] sm:$0xff]  ;;  %s162_s12 = sshll.u32 %s346_s11, 4  ;;  %s163_s12 = int_to_ptr.vmem [resolvable:$true] %s162_s12 }
  0x28   :  { %v233_v5 = vpack.c.bf16 %v48_v4, %v47_v2  ;;  %v50_v7 = vld [vmem:[#allocation5 + $0x28] sm:$0xff]  ;;  %v43_v9 = vld [vmem:[#allocation2] sm:$0xff]  ;;  %v52_v11 = vld [vmem:[#allocation5 + $0x38] sm:$0xff]  ;;  %p319_p3 = scmp.lt.s32.totalorder %s163_s12, %s163_s12 }
  0x29   :  { %230 = vmatprep.subr.bf16.mxu0 %v229_v3  ;;  %v237_v8 = vpack.c.bf16 %v50_v7, %v49_v6  ;;  %v51_v10 = vld [vmem:[#allocation5 + $0x30] sm:$0xff]  ;;  %226 = vmatprep.mubr.f32.mxu0 %v43_v9  ;;  %v53_v13 = vld [vmem:[#allocation5 + $0x40] sm:$0xff]  ;;  %v54_v14 = vld [vmem:[#allocation5 + $0x48] sm:$0xff] }
  0x2a   :  { %232 = vmatpush3.bf16.msra.mxu0 %v229_v3  ;;  %v241_v12 = vpack.c.bf16 %v52_v11, %v51_v10  ;;  %v245_v15 = vpack.c.bf16 %v54_v14, %v53_v13  ;;  %v55_v16 = vld [vmem:[#allocation5 + $0x50] sm:$0xff]  ;;  %v56_v17 = vld [vmem:[#allocation5 + $0x58] sm:$0xff]  ;;  %v57_v19 = vld [vmem:[#allocation5 + $0x60] sm:$0xff] }
  0x2b   :  { %234 = vmatprep.subr.bf16.mxu0 %v233_v5  ;;  %v249_v18 = vpack.c.bf16 %v56_v17, %v55_v16  ;;  %v58_v20 = vld [vmem:[#allocation5 + $0x68] sm:$0xff]  ;;  %v59_v22 = vld [vmem:[#allocation5 + $0x70] sm:$0xff]  ;;  %v60_v23 = vld [vmem:[#allocation5 + $0x78] sm:$0xff] }
  0x2c   :  { %v253_v21 = vpack.c.bf16 %v58_v20, %v57_v19  ;;  %v257_v24 = vpack.c.bf16 %v60_v23, %v59_v22  ;;  %v44_v25 = vld [vmem:[#allocation2 + $0x8] sm:$0xff]  ;;  %v175_v26 = vld [vmem:[%s417_s2] ss:$0 sm:$0xff]  ;;  %s314_s2 = scalar_lea.vmem %s163_s12, 256 }
  0x2d   :  { %p315_p2 = scmp.ne.s32.totalorder %s163_s12, %s314_s2  ;;  %p320_p4 = scmp.lt.s32.totalorder %s314_s2, %s314_s2 }
  0x2e   :  { %236 = vmatpush3.bf16.msra.mxu0 %v233_v5 }
  0x2f   :  { %238 = vmatprep.subr.bf16.mxu0 %v237_v8  ;;  %p321_p5 = por %p320_p4, %p319_p3 }
  0x31   :  { %p322_p6 = pnand %p321_p5, %p315_p2 }
  0x32   :  { %240 = vmatpush3.bf16.msra.mxu0 %v237_v8 }
  0x33   :  { %242 = vmatprep.subr.bf16.mxu0 %v241_v12 }
  0x36   :  { %244 = vmatpush3.bf16.msra.mxu0 %v241_v12 }
  0x37   :  { %246 = vmatprep.subr.bf16.mxu0 %v245_v15 }
  0x3a   :  { %248 = vmatpush3.bf16.msra.mxu0 %v245_v15 }
  0x3b   :  { %250 = vmatprep.subr.bf16.mxu0 %v249_v18 }
  0x3e   :  { %252 = vmatpush3.bf16.msra.mxu0 %v249_v18 }
  0x3f   :  { %254 = vmatprep.subr.bf16.mxu0 %v253_v21 }
  0x42   :  { %256 = vmatpush3.bf16.msra.mxu0 %v253_v21 }
  0x43   :  { %258 = vmatprep.subr.bf16.mxu0 %v257_v24 }
  0x46   :  { %260 = vmatpush3.bf16.msra.mxu0 %v257_v24 }
  0x49   :  { %227 = vmatmul.mubr.f32.vlgmr.msra.gmra.mrb[0].mxu0 %v44_v25 }
 0x11c   :  { %v228_v27 = vpop.f32.mrb[0].mxu0 }
 0x11d   :  { %v140_v28 = vadd.f32 %v228_v27, %v175_v26  ;;  %v134_v29 = vpop.f32.mrb[1].mxu0 }
 0x11e   :  { %v135_v30 = vadd.f32 %v175_v26, %v134_v29 }
 0x11f   :  { %v146_v31 = vmul.f32 0.70710677, %v140_v28  ;;  %v144_v35 = vmul.f32 0.5, %v140_v28 }
 0x120   :  { %v145_v32 = vmul.f32 0.70710677, %v135_v30  ;;  %v143_v37 = vmul.f32 0.5, %v135_v30 }
 0x121   :  { %266 = verf.f32 %v146_v31 }
 0x122   :  { %268 = verf.f32 %v145_v32 }
 0x12b   :  { %v267_v33 = vpop.eup %266 }
 0x12c   :  { %v269_v34 = vpop.eup %268  ;;  %v150_v36 = vadd.f32 1.0, %v267_v33 }
 0x12d   :  { %v149_v38 = vadd.f32 1.0, %v269_v34 }
 0x12e   :  { %v152_v39 = vmul.f32 %v150_v36, %v144_v35 }
 0x12f   :  { %v151_v40 = vmul.f32 %v149_v38, %v143_v37 }
 0x130   :  { %v154_v41 = vadd.f32 %v152_v39, %v44_v25 }
 0x131   :  { %v153_v42 = vadd.f32 %v151_v40, %v43_v9 }
 0x132   :  { %156 = vst [vmem:[#allocation7 + $0x8] sm:$0xff] %v154_v41 }
 0x133   :  { %155 = vst [vmem:[#allocation7] sm:$0xff] %v153_v42 }
 0x134   :  { %325 = shalt.err (!%p322_p6)
}
 0x135   :  { %s326_s15 = scalar_lea.hbm %s418_s3, 256 }
 0x136   :  { %p327_p7 = scmp.ne.s32.totalorder %s418_s3, %s326_s15  ;;  %p330_p8 = scmp.lt.u32.totalorder %s326_s15, %s418_s3 }
 0x138   :  { %p332_p9 = pnand %p330_p8, %p327_p7 }
 0x13a   :  { %335 = shalt.err (!%p332_p9)
}
 0x13b   :  { %168 = dma.vmem_to_hbm [thread:$0]  %s163_s12, 256, %s418_s3, [#allocation4], %s343_s22, %s343_s22, %s344_s23  }
 0x13c   :  { %340 = dma.done.wait [#allocation4], 256  }
 0x13d   :  { %341 = vsyncadd [#allocation4], 4294967040 }
 0x13e   :  { %172 = vsyncpa [#allocation3], 1 }
 0x13f   :  { %173 = vsyncpa [#allocation6], 1 }
 0x140   :  { %174 = vsyncpa [#allocation4], 1 }

</bundles_post_ra>
